<compile_context>
chip_gen: v7x
topology: tpu7x:2x2x1
jax: 0.10.0
libtpu: 0.0.40
codegen_flags: <defaults>
</compile_context>

<pallas_src>
import jax
import jax.numpy as jnp
from jax.experimental import pallas as pl
from jax.experimental.pallas import tpu as pltpu

IN_DIM = 784
HID_DIM = 100
HID_PAD = 128     # lane-dense hidden width
OUT_DIM = 10
TB_MAX = 512      # batch tile (safe on v5e/v6e/v7x VMEM budgets)


def _round_up(n, m):
    return ((n + m - 1) // m) * m


def mlp_kernel(x_ref, w1_ref, b1_ref, w2_ref, b2_ref, o_ref):
    # ---- fc1 (bf16 x bf16 -> f32 accumulate on MXU) + bias + ReLU ----
    h = jnp.dot(x_ref[...], w1_ref[...],
                preferred_element_type=jnp.float32)          # (TB, 128)
    h = jnp.maximum(h + b1_ref[...], 0.0)                    # f32 VPU

    # ---- fc2 ----
    logits = jnp.dot(h, w2_ref[...],
                     preferred_element_type=jnp.float32)     # (TB, 10)
    logits = logits + b2_ref[...]

    # ---- log_softmax over dim=1 (numerically stable) ----
    m = jnp.max(logits, axis=1, keepdims=True)
    shifted = logits - m
    lse = jnp.log(jnp.sum(jnp.exp(shifted), axis=1, keepdims=True))
    o_ref[...] = (shifted - lse).astype(o_ref.dtype)


@jax.jit
def neural_net_forward(x, w1, b1, w2, b2):
    """x: (B, 784) f32; returns (B, 10) f32 log-probabilities."""
    B = x.shape[0]

    # Zero-pad hidden dim 100 -> 128 (exact: ReLU(0)=0, zero w2 rows add 0).
    hpad = HID_PAD - w1.shape[1]
    if hpad > 0:
        w1 = jnp.pad(w1, ((0, 0), (0, hpad)))
        b1 = jnp.pad(b1, ((0, 0), (0, hpad)))
        w2 = jnp.pad(w2, ((0, hpad), (0, 0)))

    # bf16 for the memory-bound x stream and the MXU-native fc1 operand.
    x_bf = x.astype(jnp.bfloat16)
    w1_bf = w1.astype(jnp.bfloat16)

    # Batch tiling: TB multiple of 8, capped at TB_MAX; pad B to a multiple.
    b8 = _round_up(B, 8)
    tb = b8 if b8 <= TB_MAX else TB_MAX
    b_pad = _round_up(B, tb)
    if b_pad != B:
        x_bf = jnp.pad(x_bf, ((0, b_pad - B), (0, 0)))

    out = pl.pallas_call(
        mlp_kernel,
        out_shape=jax.ShapeDtypeStruct((b_pad, OUT_DIM), jnp.float32),
        grid=(b_pad // tb,),
        in_specs=[
            pl.BlockSpec((tb, IN_DIM), lambda i: (i, 0)),        # x tile (streamed)
            pl.BlockSpec((IN_DIM, HID_PAD), lambda i: (0, 0)),   # w1 (resident)
            pl.BlockSpec((1, HID_PAD), lambda i: (0, 0)),        # b1 (resident)
            pl.BlockSpec((HID_PAD, OUT_DIM), lambda i: (0, 0)),  # w2 (resident)
            pl.BlockSpec((1, OUT_DIM), lambda i: (0, 0)),        # b2 (resident)
        ],
        out_specs=pl.BlockSpec((tb, OUT_DIM), lambda i: (i, 0)),
        compiler_params=pltpu.CompilerParams(
            dimension_semantics=("parallel",),   # megacore sharding on v7x
        ),
    )(x_bf, w1_bf, b1, w2, b2)

    return out[:B]


def init_params(key):
    """Deterministic init mirroring nn.Linear's uniform(-1/sqrt(fan_in), +)."""
    k1, k2, k3, k4 = jax.random.split(key, 4)
    bound1 = 1.0 / jnp.sqrt(float(IN_DIM))
    bound2 = 1.0 / jnp.sqrt(float(HID_DIM))
    w1 = jax.random.uniform(k1, (IN_DIM, HID_DIM), jnp.float32, -bound1, bound1)
    b1 = jax.random.uniform(k2, (1, HID_DIM), jnp.float32, -bound1, bound1)
    w2 = jax.random.uniform(k3, (HID_DIM, OUT_DIM), jnp.float32, -bound2, bound2)
    b2 = jax.random.uniform(k4, (1, OUT_DIM), jnp.float32, -bound2, bound2)
    return w1, b1, w2, b2


if __name__ == "__main__":
    key = jax.random.PRNGKey(0)
    kx, kp = jax.random.split(key)
    B = 8
    x = jax.random.normal(kx, (B, IN_DIM), jnp.float32)
    w1, b1, w2, b2 = init_params(kp)

    out = neural_net_forward(x, w1, b1, w2, b2)
    out = jax.block_until_ready(out)

    # Sanity check against a plain-JAX reference using the same bf16-quantized
    # x / w1 operands (the kernel accumulates in f32, so only accumulation
    # order differs).
    x_q = x.astype(jnp.bfloat16).astype(jnp.float32)
    w1_q = w1.astype(jnp.bfloat16).astype(jnp.float32)
    h_ref = jnp.maximum(x_q @ w1_q + b1, 0.0)
    logits_ref = h_ref @ w2 + b2
    ref = jax.nn.log_softmax(logits_ref, axis=1)

    assert out.shape == (B, OUT_DIM)
    assert jnp.allclose(out, ref, atol=1e-4, rtol=1e-4), (
        float(jnp.max(jnp.abs(out - ref))))

    print("KERNEL_OK")
</pallas_src>

<mosaic_0001>
module attributes {stable_mosaic.version = 11 : i64} {
  func.func @mlp_kernel(%arg0: i32, %arg1: memref<8x784xbf16, #tpu.memory_space<vmem>>, %arg2: memref<784x128xbf16, #tpu.memory_space<vmem>>, %arg3: memref<1x128xf32, #tpu.memory_space<vmem>>, %arg4: memref<128x10xf32, #tpu.memory_space<vmem>>, %arg5: memref<1x10xf32, #tpu.memory_space<vmem>>, %arg6: memref<8x10xf32, #tpu.memory_space<vmem>>) attributes {dimension_semantics = [#tpu.dimension_semantics<parallel>], iteration_bounds = array<i64: 1>, scalar_prefetch = 0 : i64, scratch_operands = 0 : i64, tpu.core_type = #tpu.core_type<tc>, window_params = [{transform_indices = @transform_0, window_bounds = array<i64: 8, 784>}, {pipeline_mode = #tpu.pipeline_mode<synchronous>, transform_indices = @transform_1, window_bounds = array<i64: 784, 128>}, {pipeline_mode = #tpu.pipeline_mode<synchronous>, transform_indices = @transform_2, window_bounds = array<i64: 1, 128>}, {pipeline_mode = #tpu.pipeline_mode<synchronous>, transform_indices = @transform_3, window_bounds = array<i64: 128, 10>}, {pipeline_mode = #tpu.pipeline_mode<synchronous>, transform_indices = @transform_4, window_bounds = array<i64: 1, 10>}, {transform_indices = @transform_5, window_bounds = array<i64: 8, 10>}]} {
    %c0 = arith.constant 0 : index
    %c0_0 = arith.constant 0 : index
    %0 = vector.load %arg1[%c0, %c0_0] : memref<8x784xbf16, #tpu.memory_space<vmem>>, vector<8x784xbf16>
    %c0_1 = arith.constant 0 : index
    %c0_2 = arith.constant 0 : index
    %1 = vector.load %arg2[%c0_1, %c0_2] : memref<784x128xbf16, #tpu.memory_space<vmem>>, vector<784x128xbf16>
    %cst = arith.constant dense<0.000000e+00> : vector<8x128xf32>
    %2 = tpu.matmul %0, %1, %cst {dimension_numbers = #tpu.dot_dimension_numbers<[1], [0], [0], [1], [0, 0, 1, 1], [], []>} : vector<8x784xbf16>, vector<784x128xbf16>, vector<8x128xf32> -> vector<8x128xf32>
    %c0_3 = arith.constant 0 : index
    %c0_4 = arith.constant 0 : index
    %3 = vector.load %arg3[%c0_3, %c0_4] : memref<1x128xf32, #tpu.memory_space<vmem>>, vector<1x128xf32>
    %4 = vector.broadcast %3 : vector<1x128xf32> to vector<8x128xf32>
    %5 = arith.addf %2, %4 : vector<8x128xf32>
    %cst_5 = arith.constant 0.000000e+00 : f32
    %6 = vector.broadcast %cst_5 : f32 to vector<8x128xf32>
    %7 = arith.maximumf %5, %6 : vector<8x128xf32>
    %c0_6 = arith.constant 0 : index
    %c0_7 = arith.constant 0 : index
    %8 = vector.load %arg4[%c0_6, %c0_7] : memref<128x10xf32, #tpu.memory_space<vmem>>, vector<128x10xf32>
    %cst_8 = arith.constant dense<0.000000e+00> : vector<8x10xf32>
    %9 = tpu.matmul %7, %8, %cst_8 {dimension_numbers = #tpu.dot_dimension_numbers<[1], [0], [0], [1], [0, 0, 1, 1], [], []>} : vector<8x128xf32>, vector<128x10xf32>, vector<8x10xf32> -> vector<8x10xf32>
    %c0_9 = arith.constant 0 : index
    %c0_10 = arith.constant 0 : index
    %10 = vector.load %arg5[%c0_9, %c0_10] : memref<1x10xf32, #tpu.memory_space<vmem>>, vector<1x10xf32>
    %11 = vector.broadcast %10 : vector<1x10xf32> to vector<8x10xf32>
    %12 = arith.addf %9, %11 : vector<8x10xf32>
    %cst_11 = arith.constant dense<0xFF800000> : vector<8xf32>
    %13 = vector.multi_reduction <maximumf>, %12, %cst_11 [1] : vector<8x10xf32> to vector<8xf32>
    %14 = vector.shape_cast %13 : vector<8xf32> to vector<8x1xf32>
    %15 = vector.broadcast %14 : vector<8x1xf32> to vector<8x10xf32>
    %16 = arith.subf %12, %15 : vector<8x10xf32>
    %17 = math.exp %16 : vector<8x10xf32>
    %cst_12 = arith.constant dense<0.000000e+00> : vector<8xf32>
    %18 = vector.multi_reduction <add>, %17, %cst_12 [1] : vector<8x10xf32> to vector<8xf32>
    %19 = vector.shape_cast %18 : vector<8xf32> to vector<8x1xf32>
    %20 = math.log %19 : vector<8x1xf32>
    %21 = vector.broadcast %20 : vector<8x1xf32> to vector<8x10xf32>
    %22 = arith.subf %16, %21 : vector<8x10xf32>
    %c0_13 = arith.constant 0 : index
    %c0_14 = arith.constant 0 : index
    %23 = vector.load %arg6[%c0_13, %c0_14] : memref<8x10xf32, #tpu.memory_space<vmem>>, vector<8x10xf32>
    tpu.vector_store %arg6[%c0_13, %c0_14], %22 {strides = array<i32>} : memref<8x10xf32, #tpu.memory_space<vmem>>, vector<8x10xf32>,
    return
  }
  func.func @transform_0(%arg0: i32) -> (i32, i32) {
    %c0_i32 = arith.constant 0 : i32
    %c0_i32_0 = arith.constant 0 : i32
    return %arg0, %c0_i32 : i32, i32
  }
  func.func @transform_1(%arg0: i32) -> (i32, i32) {
    %c0_i32 = arith.constant 0 : i32
    %c0_i32_0 = arith.constant 0 : i32
    %c0_i32_1 = arith.constant 0 : i32
    return %c0_i32, %c0_i32_0 : i32, i32
  }
  func.func @transform_2(%arg0: i32) -> (i32, i32) {
    %c0_i32 = arith.constant 0 : i32
    %c0_i32_0 = arith.constant 0 : i32
    %c0_i32_1 = arith.constant 0 : i32
    return %c0_i32, %c0_i32_0 : i32, i32
  }
  func.func @transform_3(%arg0: i32) -> (i32, i32) {
    %c0_i32 = arith.constant 0 : i32
    %c0_i32_0 = arith.constant 0 : i32
    %c0_i32_1 = arith.constant 0 : i32
    return %c0_i32, %c0_i32_0 : i32, i32
  }
  func.func @transform_4(%arg0: i32) -> (i32, i32) {
    %c0_i32 = arith.constant 0 : i32
    %c0_i32_0 = arith.constant 0 : i32
    %c0_i32_1 = arith.constant 0 : i32
    return %c0_i32, %c0_i32_0 : i32, i32
  }
  func.func @transform_5(%arg0: i32) -> (i32, i32) {
    %c0_i32 = arith.constant 0 : i32
    %c0_i32_0 = arith.constant 0 : i32
    return %arg0, %c0_i32 : i32, i32
  }
}

</mosaic_0001>

<bundles_post_ra>
// kernel: neural_net_forward.1
= control target key start
LH: loop header
LB: loop body
LE: loop exit
PB: predicated region body
PF: predicated region fallthrough
CT: control target
= control target key end

     0   :  { %v1032_v43 = vmov 0.0   ;;  %vm1033_vm0 = vmmov 0   ;;  %s1296_s0 = inlined_call_operand.vmem [shape: bf16[8,784], index: 0, kind: input, shape index: {}]   ;;  %s1297_s1 = inlined_call_operand.vmem [shape: bf16[784,128], index: 1, kind: input, shape index: {}]   ;;  %s1298_s2 = inlined_call_operand.vmem [shape: f32[1,128], index: 2, kind: input, shape index: {}]   ;;  %s1299_s3 = inlined_call_operand.vmem [shape: f32[128,10], index: 3, kind: input, shape index: {}]   ;;  %s1300_s4 = inlined_call_operand.vmem [shape: f32[1,10], index: 4, kind: input, shape index: {}]   ;;  %s1301_s5 = inlined_call_operand.hbm [shape: f32[8,10], index: 5, kind: output, shape index: {}]  }
   0x1   :  { %v948_v0 = vld [vmem:[%s1297_s1 + $0x40] sm:$0xff]   ;;  %v952_v4 = vld [vmem:[%s1297_s1 + $0x48] sm:$0xff]   ;;  %v956_v8 = vld [vmem:[%s1297_s1 + $0x50] sm:$0xff]  }
   0x2   :  { %v949_v1 = vld [vmem:[%s1297_s1] sm:$0xff]   ;;  %794 = vmatprep.subr.bf16.mxu0 %v948_v0  ;;  %v953_v5 = vld [vmem:[%s1297_s1 + $0x8] sm:$0xff]   ;;  %v957_v9 = vld [vmem:[%s1297_s1 + $0x10] sm:$0xff]  }
   0x3   :  { %v950_v2 = vld [vmem:[%s1297_s1 + $0xc0] sm:$0xff]   ;;  %795 = vmatpush3.bf16.msra.mxu0 %v949_v1  ;;  %v954_v6 = vld [vmem:[%s1297_s1 + $0xc8] sm:$0xff]   ;;  %v958_v10 = vld [vmem:[%s1297_s1 + $0xd0] sm:$0xff]  }
   0x4   :  { %v951_v3 = vld [vmem:[%s1297_s1 + $0x80] sm:$0xff]   ;;  %816 = vmatprep.subr.bf16.mxu1 %v950_v2  ;;  %796 = vmatprep.subr.bf16.mxu0 %v952_v4  ;;  %v955_v7 = vld [vmem:[%s1297_s1 + $0x88] sm:$0xff]   ;;  %v959_v11 = vld [vmem:[%s1297_s1 + $0x90] sm:$0xff]  }
   0x5   :  { %817 = vmatpush3.bf16.msra.mxu1 %v951_v3  ;;  %v960_v12 = vld [vmem:[%s1297_s1 + $0x58] sm:$0xff]   ;;  %v964_v16 = vld [vmem:[%s1297_s1 + $0x60] sm:$0xff]   ;;  %v968_v20 = vld [vmem:[%s1297_s1 + $0x68] sm:$0xff]  }
   0x6   :  { %818 = vmatprep.subr.bf16.mxu1 %v954_v6  ;;  %v961_v13 = vld [vmem:[%s1297_s1 + $0x18] sm:$0xff]   ;;  %v965_v17 = vld [vmem:[%s1297_s1 + $0x20] sm:$0xff]   ;;  %v969_v21 = vld [vmem:[%s1297_s1 + $0x28] sm:$0xff]  }
   0x7   :  { %797 = vmatpush3.bf16.msra.mxu0 %v953_v5  ;;  %v962_v14 = vld [vmem:[%s1297_s1 + $0xd8] sm:$0xff]   ;;  %v966_v18 = vld [vmem:[%s1297_s1 + $0xe0] sm:$0xff]   ;;  %v970_v22 = vld [vmem:[%s1297_s1 + $0xe8] sm:$0xff]  }
   0x8   :  { %798 = vmatprep.subr.bf16.mxu0 %v956_v8  ;;  %v963_v15 = vld [vmem:[%s1297_s1 + $0x98] sm:$0xff]   ;;  %v967_v19 = vld [vmem:[%s1297_s1 + $0xa0] sm:$0xff]   ;;  %v971_v23 = vld [vmem:[%s1297_s1 + $0xa8] sm:$0xff]  }
   0x9   :  { %819 = vmatpush3.bf16.msra.mxu1 %v955_v7  ;;  %v972_v24 = vld [vmem:[%s1297_s1 + $0x70] sm:$0xff]   ;;  %v976_v28 = vld [vmem:[%s1297_s1 + $0x78] sm:$0xff]   ;;  %v22_v31 = vld [vmem:[%s1296_s0] sm:$0xff] }
   0xa   :  { %820 = vmatprep.subr.bf16.mxu1 %v958_v10  ;;  %v973_v25 = vld [vmem:[%s1297_s1 + $0x30] sm:$0xff]   ;;  %v977_v29 = vld [vmem:[%s1297_s1 + $0x38] sm:$0xff]   ;;  %v736_v32 = vcombine.low %v22_v31, %v22_v31  ;;  %v737_v33 = vcombine.high %v22_v31, %v22_v31  ;;  %v982_v35 = vld [vmem:[%s1297_s1 + $0x140] sm:$0xff]  }
   0xb   :  { %799 = vmatpush3.bf16.msra.mxu0 %v957_v9  ;;  %v974_v26 = vld [vmem:[%s1297_s1 + $0xf0] sm:$0xff]   ;;  %v978_v30 = vld [vmem:[%s1297_s1 + $0xf8] sm:$0xff]   ;;  %v23_v36 = vld [vmem:[%s1296_s0 + $0x8] sm:$0xff] }
   0xc   :  { %800 = vmatprep.subr.bf16.mxu0 %v960_v12  ;;  %v975_v27 = vld [vmem:[%s1297_s1 + $0xb0] sm:$0xff]   ;;  %v981_v34 = vld [vmem:[%s1297_s1 + $0xb8] sm:$0xff]   ;;  %485 = vmatprep.mubr.bf16.mxu0 %v737_v33  ;;  %v738_v37 = vcombine.low %v23_v36, %v23_v36  ;;  %v739_v38 = vcombine.high %v23_v36, %v23_v36  ;;  %v985_v39 = vld [vmem:[%s1297_s1 + $0x100] sm:$0xff]  }
   0xd   :  { %821 = vmatpush3.bf16.msra.mxu1 %v959_v11  ;;  %v986_v40 = vld [vmem:[%s1297_s1 + $0x148] sm:$0xff]   ;;  %v988_v42 = vld [vmem:[%s1297_s1 + $0x150] sm:$0xff]   ;;  %v990_v45 = vld [vmem:[%s1297_s1 + $0x158] sm:$0xff]  }
   0xe   :  { %822 = vmatprep.subr.bf16.mxu1 %v962_v14  ;;  %525 = vmatprep.mubr.bf16.mxu1 %v739_v38  ;;  %v987_v41 = vld [vmem:[%s1297_s1 + $0x108] sm:$0xff]   ;;  %v989_v44 = vld [vmem:[%s1297_s1 + $0x110] sm:$0xff]   ;;  %v991_v46 = vld [vmem:[%s1297_s1 + $0x118] sm:$0xff]  }
   0xf   :  { %801 = vmatpush3.bf16.msra.mxu0 %v961_v13  ;;  %v992_v47 = vld [vmem:[%s1297_s1 + $0x160] sm:$0xff]   ;;  %v994_v49 = vld [vmem:[%s1297_s1 + $0x168] sm:$0xff]   ;;  %v24_v51 = vld [vmem:[%s1296_s0 + $0x10] sm:$0xff] }
  0x10   :  { %802 = vmatprep.subr.bf16.mxu0 %v964_v16  ;;  %v993_v48 = vld [vmem:[%s1297_s1 + $0x120] sm:$0xff]   ;;  %v741_v52 = vcombine.high %v24_v51, %v24_v51  ;;  %v1003_v53 = vld [vmem:[%s1296_s0 + $0x18] ss:$0 sps:$4 sm:$0xff]  }
  0x11   :  { %823 = vmatpush3.bf16.msra.mxu1 %v963_v15  ;;  %v1000_v50 = vld [vmem:[%s1297_s1 + $0x180] sm:$0xff]  }
  0x12   :  { %824 = vmatprep.subr.bf16.mxu1 %v966_v18 }
  0x13   :  { %803 = vmatpush3.bf16.msra.mxu0 %v965_v17 }
  0x14   :  { %804 = vmatprep.subr.bf16.mxu0 %v968_v20 }
  0x15   :  { %825 = vmatpush3.bf16.msra.mxu1 %v967_v19 }
  0x16   :  { %826 = vmatprep.subr.bf16.mxu1 %v970_v22 }
  0x17   :  { %805 = vmatpush3.bf16.msra.mxu0 %v969_v21 }
  0x18   :  { %806 = vmatprep.subr.bf16.mxu0 %v972_v24 }
  0x19   :  { %827 = vmatpush3.bf16.msra.mxu1 %v971_v23 }
  0x1a   :  { %828 = vmatprep.subr.bf16.mxu1 %v974_v26 }
  0x1b   :  { %807 = vmatpush3.bf16.msra.mxu0 %v973_v25 }
  0x1c   :  { %808 = vmatprep.subr.bf16.mxu0 %v976_v28 }
  0x1d   :  { %829 = vmatpush3.bf16.msra.mxu1 %v975_v27 }
  0x1e   :  { %830 = vmatprep.subr.bf16.mxu1 %v978_v30 }
  0x1f   :  { %809 = vmatpush3.bf16.msra.mxu0 %v977_v29 }
  0x20   :  { %838 = vmatprep.subr.bf16.mxu0 %v982_v35 }
  0x21   :  { %831 = vmatpush3.bf16.msra.mxu1 %v981_v34 }
  0x22   :  { %486 = vmatmul.mubr.bf16.vlgmr.msra.gmra.mrb[0].mxu0 %v736_v32  ;;  %879 = vmatprep.subr.bf16.mxu1 %v1032_v43 }
  0x23   :  { %839 = vmatpush3.bf16.msra.mxu0 %v985_v39 }
  0x24   :  { %526 = vmatmul.mubr.bf16.vlgmr.msra.gmra.mrb[0].mxu1 %v738_v37  ;;  %840 = vmatprep.subr.bf16.mxu0 %v986_v40 }
  0x25   :  { %881 = vmatprep.mubr.msk.bf16.mxu1 %vm1033_vm0, %v1032_v43 }
  0x27   :  { %841 = vmatpush3.bf16.msra.mxu0 %v987_v41 }
  0x28   :  { %842 = vmatprep.subr.bf16.mxu0 %v988_v42 }
  0x2b   :  { %843 = vmatpush3.bf16.msra.mxu0 %v989_v44 }
  0x2c   :  { %844 = vmatprep.subr.bf16.mxu0 %v990_v45 }
  0x2f   :  { %845 = vmatpush3.bf16.msra.mxu0 %v991_v46 }
  0x30   :  { %846 = vmatprep.subr.bf16.mxu0 %v992_v47 }
  0x31   :  { %10 = vsyncpa [#allocation3], 0  ;;  %880 = vmatpush3.bf16.msra.mxu1 %v1000_v50  ;;  %vm449_vm1 = vcmask 130048   ;;  %v995_v54 = vld [vmem:[%s1297_s1 + $0x128] sm:$0xff]   ;;  %565 = vmatprep.mubr.bf16.mxu0 %v741_v52  ;;  %v996_v55 = vld [vmem:[%s1297_s1 + $0x170] sm:$0xff]   ;;  %v740_v59 = vcombine.low %v24_v51, %v24_v51  ;;  %v1034_v63 = vmov 0.0|0.0  }
  0x32   :  { %v997_v56 = vld [vmem:[%s1297_s1 + $0x130] sm:$0xff]   ;;  %v998_v57 = vld [vmem:[%s1297_s1 + $0x178] sm:$0xff]   ;;  %v614_v60 = vld [vmem:[%s1299_s3] sm:$0xff]  ;;  %920 = vmatprep.subr.bf16.mxu1 %v1034_v63  ;;  %vm707_vm2 = vcmask 80896   ;;  %s1035_s29 = smov [#allocation2]  }
  0x33   :  { %847 = vmatpush3.bf16.msra.mxu0 %v993_v48  ;;  %v999_v58 = vld [vmem:[%s1297_s1 + $0x138] sm:$0xff]   ;;  %v615_v61 = vld [vmem:[%s1299_s3 + $0x8] sm:$0xff]  ;;  %v616_v62 = vld [vmem:[%s1299_s3 + $0x10] sm:$0xff] }
  0x34   :  { %848 = vmatprep.subr.bf16.mxu0 %v994_v49  ;;  %882 = vmatmul.mubr.msk.bf16.vlgmr.msra.gmra.mrb[4].mxu1 %vm449_vm1, %v1003_v53  ;;  %v921_v0 = vpack.c.bf16 %v615_v61, %v614_v60  ;;  %v617_v1 = vld [vmem:[%s1299_s3 + $0x18] sm:$0xff]  ;;  %v618_v3 = vld [vmem:[%s1299_s3 + $0x20] sm:$0xff]  ;;  %v619_v4 = vld [vmem:[%s1299_s3 + $0x28] sm:$0xff] }
  0x35   :  { %917 = vmatprep.mubr.msk.f32.mxu1 %vm1033_vm0, %v1032_v43  ;;  %v924_v2 = vpack.c.bf16 %v617_v1, %v616_v62  ;;  %v927_v5 = vpack.c.bf16 %v619_v4, %v618_v3  ;;  %v620_v6 = vld [vmem:[%s1299_s3 + $0x30] sm:$0xff]  ;;  %v621_v7 = vld [vmem:[%s1299_s3 + $0x38] sm:$0xff]  ;;  %v622_v9 = vld [vmem:[%s1299_s3 + $0x40] sm:$0xff] }
  0x36   :  { %922 = vmatpush3.bf16.msra.mxu1 %v921_v0  ;;  %v930_v8 = vpack.c.bf16 %v621_v7, %v620_v6  ;;  %v623_v10 = vld [vmem:[%s1299_s3 + $0x48] sm:$0xff]  ;;  %v624_v12 = vld [vmem:[%s1299_s3 + $0x50] sm:$0xff]  ;;  %v625_v13 = vld [vmem:[%s1299_s3 + $0x58] sm:$0xff] }
  0x37   :  { %849 = vmatpush3.bf16.msra.mxu0 %v995_v54  ;;  %923 = vmatprep.subr.bf16.mxu1 %v1034_v63  ;;  %v933_v11 = vpack.c.bf16 %v623_v10, %v622_v9  ;;  %v936_v14 = vpack.c.bf16 %v625_v13, %v624_v12  ;;  %v626_v15 = vld [vmem:[%s1299_s3 + $0x60] sm:$0xff]  ;;  %v627_v16 = vld [vmem:[%s1299_s3 + $0x68] sm:$0xff]  ;;  %v628_v18 = vld [vmem:[%s1299_s3 + $0x70] sm:$0xff] }
  0x38   :  { %850 = vmatprep.subr.bf16.mxu0 %v996_v55  ;;  %v939_v17 = vpack.c.bf16 %v627_v16, %v626_v15  ;;  %v629_v19 = vld [vmem:[%s1299_s3 + $0x78] sm:$0xff]  ;;  %v735_v22 = vld [vmem:[%s1298_s2] ss:$0 sm:$0xff] }
  0x39   :  { %v942_v20 = vpack.c.bf16 %v629_v19, %v628_v18  ;;  %v793_v46 = vld [vmem:[%s1300_s4] ss:$0 sm:$0xff]  ;;  %s727_s4 = sshll.u32 %s1035_s29, 4  ;;  %s728_s4 = int_to_ptr.vmem [resolvable:$true] %s727_s4 }
  0x3a   :  { %925 = vmatpush3.bf16.msra.mxu1 %v924_v2  ;;  %s1008_s30 = scalar_lea.vmem %s728_s4, 128  ;;  %p1013_p1 = scmp.lt.s32.totalorder %s728_s4, %s728_s4 }
  0x3b   :  { %851 = vmatpush3.bf16.msra.mxu0 %v997_v56  ;;  %926 = vmatprep.subr.bf16.mxu1 %v1034_v63  ;;  %p1009_p0 = scmp.ne.s32.totalorder %s728_s4, %s1008_s30  ;;  %p1014_p2 = scmp.lt.s32.totalorder %s1008_s30, %s1008_s30 }
  0x3c   :  { %852 = vmatprep.subr.bf16.mxu0 %v998_v57 }
  0x3d   :  { %p1015_p3 = por %p1014_p2, %p1013_p1 }
  0x3e   :  { %928 = vmatpush3.bf16.msra.mxu1 %v927_v5 }
  0x3f   :  { %853 = vmatpush3.bf16.msra.mxu0 %v999_v58  ;;  %929 = vmatprep.subr.bf16.mxu1 %v1034_v63  ;;  %p1016_p4 = pnand %p1015_p3, %p1009_p0 }
  0x42   :  { %566 = vmatmul.mubr.bf16.vlgmr.msra.gmra.mrb[4].mxu0 %v740_v59  ;;  %931 = vmatpush3.bf16.msra.mxu1 %v930_v8 }
  0x43   :  { %932 = vmatprep.subr.bf16.mxu1 %v1034_v63 }
  0x46   :  { %934 = vmatpush3.bf16.msra.mxu1 %v933_v11 }
  0x47   :  { %935 = vmatprep.subr.bf16.mxu1 %v1034_v63 }
  0x4a   :  { %937 = vmatpush3.bf16.msra.mxu1 %v936_v14 }
  0x4b   :  { %938 = vmatprep.subr.bf16.mxu1 %v1034_v63 }
  0x4e   :  { %940 = vmatpush3.bf16.msra.mxu1 %v939_v17 }
  0x4f   :  { %941 = vmatprep.subr.bf16.mxu1 %v1034_v63 }
  0x52   :  { %943 = vmatpush3.bf16.msra.mxu1 %v942_v20 }
  0xf5   :  { %v810_v21 = vpop.f32.mrb[0].mxu0 }
  0xf6   :  { %v811_v23 = vpop.f32.mrb[1].mxu0 }
  0xf7   :  { %v812_v24 = vadd.f32 %v811_v23, %v810_v21  ;;  %v813_v25 = vpop.f32.mrb[2].mxu0  ;;  %v832_v26 = vpop.f32.mrb[0].mxu1 }
  0xf8   :  { %v814_v27 = vpop.f32.mrb[3].mxu0  ;;  %v833_v28 = vpop.f32.mrb[1].mxu1 }
  0xf9   :  { %v488_v29 = vadd.f32 %v812_v24, %v735_v22  ;;  %v834_v30 = vadd.f32 %v833_v28, %v832_v26  ;;  %v835_v31 = vpop.f32.mrb[2].mxu1 }
  0xfa   :  { %v836_v32 = vpop.f32.mrb[3].mxu1 }
  0xfb   :  { %v528_v33 = vadd.f32 %v834_v30, %v488_v29 }
 0x107   :  { %v607_v34 = vpop.f32.mrb[4].mxu1 }
 0x108   :  { %v883_v35 = vpop.f32.mrb[5].mxu1 }
 0x109   :  { %v610_v36 = vpop.f32.mrb[6].mxu1 }
 0x10a   :  { %v884_v37 = vpop.f32.mrb[7].mxu1 }
 0x115   :  { %v854_v38 = vpop.f32.mrb[4].mxu0 }
 0x116   :  { %v855_v39 = vpop.f32.mrb[5].mxu0 }
 0x117   :  { %v856_v40 = vadd.f32 %v855_v39, %v854_v38  ;;  %v857_v41 = vpop.f32.mrb[6].mxu0 }
 0x118   :  { %v858_v42 = vpop.f32.mrb[7].mxu0 }
 0x119   :  { %v568_v43 = vadd.f32 %v856_v40, %v528_v33 }
 0x11b   :  { %v608_v44 = vadd.f32 %v607_v34, %v568_v43 }
 0x11d   :  { %v613_v45 = vmax.f32 %v608_v44, 0.0 }
 0x11f   :  { %918 = vmatmul.mubr.f32.vlgmr.msra.gmra.mrb[8].mxu1 %v613_v45 }
 0x1f2   :  { %v703_v47 = vpop.f32.mrb[8].mxu1 }
 0x1f3   :  { %v704_v48 = vadd.f32 %v793_v46, %v703_v47  ;;  %v919_v49 = vpop.f32.mrb[9].mxu1 }
 0x1f5   :  { %v708_v50 = vsel %vm707_vm2, %v704_v48, -inf }
 0x1f6   :  { %709 = vmax.xlane.f32.xlu0 %v708_v50 }
 0x283   :  { %v710_v51 = vpop.xlane.xlu0 %709 }
 0x284   :  { %v711_v52 = vsub.f32 %v704_v48, %v710_v51 }
 0x286   :  { %v712_v53 = vmul.f32 1.442695, %v711_v52 }
 0x288   :  { %1004 = vpow2.f32 %v712_v53 }
 0x292   :  { %v1005_v54 = vpop.eup %1004 }
 0x293   :  { %v714_v55 = vsel %vm707_vm2, %v1005_v54, 0.0 }
 0x294   :  { %715 = vadd.xlane.f32.xlu0 %v714_v55 }
 0x321   :  { %v716_v56 = vpop.xlane.xlu0 %715 }
 0x322   :  { %1006 = vlog2.f32 %v716_v56 }
 0x32c   :  { %v1007_v57 = vpop.eup %1006 }
 0x32d   :  { %v718_v58 = vmul.f32 0.6931472, %v1007_v57 }
 0x32f   :  { %v719_v59 = vsub.f32 %v711_v52, %v718_v58 }
 0x331   :  { %720 = vst.msk [vmem:[#allocation2] sm:$0xff] %vm707_vm2, %v719_v59 }
 0x332   :  { %1019 = shalt.err (!%p1016_p4)
}
 0x333   :  { %s1020_s8 = scalar_lea.hbm %s1301_s5, 128 }
 0x334   :  { %p1021_p5 = scmp.ne.s32.totalorder %s1301_s5, %s1020_s8  ;;  %p1024_p6 = scmp.lt.u32.totalorder %s1020_s8, %s1301_s5 }
 0x336   :  { %p1026_p7 = pnand %p1024_p6, %p1021_p5 }
 0x338   :  { %1029 = shalt.err (!%p1026_p7)
}
 0x339   :  { %730 = dma.vmem_to_hbm [thread:$0]  %s728_s4, 128, %s1301_s5, [#allocation3]  }
 0x33a   :  { %1030 = dma.done.wait [#allocation3], 128  }
 0x33b   :  { %1031 = vsyncadd [#allocation3], 4294967168 }
 0x33c   :  { %734 = vsyncpa [#allocation3], 1 }

</bundles_post_ra>
